<compile_context>
chip_gen: v7x
topology: tpu7x:2x2x1
jax: 0.10.0
libtpu: 0.0.40
codegen_flags: <defaults>
</compile_context>

<pallas_src>
import functools

import jax
import jax.numpy as jnp
from jax.experimental import pallas as pl
from jax.experimental.pallas import tpu as pltpu


# ---------------------------------------------------------------------------
# Python-side metric writer stub (mimics MetricWriter.add_scalar)
# ---------------------------------------------------------------------------
class _MetricWriter:
    """Minimal stand-in for lizrd's MetricWriter (no tensorboard backend)."""

    def __init__(self):
        self.logged = []

    def add_scalar(self, name, value):
        # TODO(synk): real module writes to a tensorboard SummaryWriter; there
        # is no Pallas equivalent for that host-side I/O, so we store in a list.
        self.logged.append((name, float(value)))


METRIC_WRITER = _MetricWriter()


# ---------------------------------------------------------------------------
# Backward-hook compute: aggregate = mean(grad) over all elements (tiled)
# ---------------------------------------------------------------------------
_LANES = 1024          # lane-dense slab width: multiple of 128 (8 vregs wide)
_MAX_TILE_ROWS = 512   # 512 x 1024 x 4 B = 2 MiB per f32 tile (4 MiB dbl-buffered)


def _sum_tile_kernel(g_ref, o_ref, acc_ref, *, inv_n):
    i = pl.program_id(0)

    @pl.when(i == 0)
    def _():
        acc_ref[...] = jnp.zeros_like(acc_ref)

    # One cross-lane/sublane reduce per tile, accumulated in f32.
    acc_ref[...] += jnp.sum(g_ref[...].astype(jnp.float32))

    # Single divide + single output store, only on the last grid step.
    @pl.when(i == pl.num_programs(0) - 1)
    def _():
        o_ref[...] = acc_ref[...] * jnp.float32(inv_n)


def grad_mean_pallas(grad):
    """Pallas reduction implementing `torch.mean(grad_output[0])`."""
    n = grad.size
    if n == 0:
        return jnp.float32(float("nan"))  # torch.mean of empty tensor is nan

    # Wrapper-side layout fix: flatten NCHW (W=16 would use 16/128 lanes) into
    # a lane-dense 2D slab.  Reshape of a contiguous array is free; zero-pad
    # (only when shape is not divisible) does not change the sum.
    flat = grad.reshape(-1)
    rows_needed = (n + _LANES - 1) // _LANES
    tile_rows = min(_MAX_TILE_ROWS, ((rows_needed + 7) // 8) * 8)  # multiple of 8
    padded_rows = ((rows_needed + tile_rows - 1) // tile_rows) * tile_rows
    pad = padded_rows * _LANES - n
    if pad:
        flat = jnp.pad(flat, (0, pad))
    slab = flat.reshape(padded_rows, _LANES)
    num_tiles = padded_rows // tile_rows

    out = pl.pallas_call(
        functools.partial(_sum_tile_kernel, inv_n=1.0 / n),
        out_shape=jax.ShapeDtypeStruct((1, 1), jnp.float32),
        grid_spec=pltpu.PrefetchScalarGridSpec(
            num_scalar_prefetch=0,
            grid=(num_tiles,),
            in_specs=[pl.BlockSpec((tile_rows, _LANES), lambda i: (i, 0))],
            out_specs=pl.BlockSpec((1, 1), lambda i: (0, 0)),
            scratch_shapes=[pltpu.VMEM((1, 1), jnp.float32)],
        ),
        compiler_params=pltpu.CompilerParams(
            # reduction axis carries the accumulator -> "arbitrary"
            dimension_semantics=("arbitrary",),
            # explicit, generation-safe cap (<= scoped default on v6e/v7x,
            # < physical on all of v5e/v6e/v7x); tiles are well under it.
            vmem_limit_bytes=32 * 1024 * 1024,
        ),
    )(slab)
    return out[0, 0]


# ---------------------------------------------------------------------------
# Forward + backward-hook wiring (mimics register_full_backward_hook)
# ---------------------------------------------------------------------------
@jax.custom_vjp
def log_gradient_forward(x):
    # Forward is semantically a no-op: return x directly, no Pallas copy and
    # no HBM traffic on the forward path.
    return x


def _fwd(x):
    return x, None


def _bwd(_, g):
    # The hook observes the gradient: compute mean via the Pallas reduction
    # and log it through a (side-effecting) callback so it is not DCE'd.
    aggregate = grad_mean_pallas(g)
    jax.debug.callback(
        lambda v: METRIC_WRITER.add_scalar("LogGradient_grad_mean/0", v), aggregate
    )
    # Gradient passes through unchanged (forward is identity).
    return (g,)


log_gradient_forward.defvjp(_fwd, _bwd)


if __name__ == "__main__":
    key = jax.random.PRNGKey(0)
    k1, k2 = jax.random.split(key)

    # Small NCHW input, consistent with a conv-style activation.
    x = jax.random.normal(k1, (2, 4, 16, 16), dtype=jnp.float32)

    # Forward pass (identity, no kernel launched).
    y = log_gradient_forward(x)
    y = jax.block_until_ready(y)
    assert y.shape == x.shape and y.dtype == x.dtype
    assert bool(jnp.allclose(y, x)), "identity forward mismatch"

    # Direct check of the Pallas tiled mean-reduction (the hook aggregate).
    grad_out = jax.random.normal(k2, (2, 4, 16, 16), dtype=jnp.float32)
    logged = grad_mean_pallas(grad_out)
    logged = jax.block_until_ready(logged)
    ref = jnp.mean(grad_out)
    assert bool(jnp.allclose(logged, ref, atol=1e-6, rtol=1e-6)), "grad mean mismatch"

    # custom_vjp path: gradient passes through identity, aggregate gets logged
    # to the MetricWriter stub via the Pallas kernel + debug callback.
    g = jax.grad(lambda t: jnp.sum(log_gradient_forward(t) * grad_out))(x)
    g = jax.block_until_ready(g)
    assert bool(jnp.allclose(g, grad_out)), "identity backward mismatch"

    jax.effects_barrier()
    assert len(METRIC_WRITER.logged) >= 1, "aggregate was not logged"
    _name, val = METRIC_WRITER.logged[-1]
    assert abs(val - float(ref)) < 1e-5, "logged aggregate mismatch"

    print("KERNEL_OK")
</pallas_src>

<mosaic_0001>
module attributes {stable_mosaic.version = 11 : i64} {
  func.func @_sum_tile_kernel(%arg0: i32, %arg1: memref<8x1024xf32, #tpu.memory_space<vmem>>, %arg2: memref<1x1xf32, #tpu.memory_space<vmem>>, %arg3: memref<1x1xf32, #tpu.memory_space<vmem>>) attributes {dimension_semantics = [#tpu.dimension_semantics<arbitrary>], iteration_bounds = array<i64: 1>, scalar_prefetch = 0 : i64, scratch_operands = 1 : i64, tpu.core_type = #tpu.core_type<tc>, window_params = [{transform_indices = @transform_0, window_bounds = array<i64: 8, 1024>}, {pipeline_mode = #tpu.pipeline_mode<synchronous>, transform_indices = @transform_1, window_bounds = array<i64: 1, 1>}]} {
    %c0_i32 = arith.constant 0 : i32
    %0 = arith.cmpi eq, %arg0, %c0_i32 : i32
    %1 = arith.extui %0 : i1 to i32
    %c0_i32_0 = arith.constant 0 : i32
    %2 = arith.cmpi ne, %1, %c0_i32_0 : i32
    scf.if %2 {
      %cst_8 = arith.constant 0.000000e+00 : f32
      %15 = vector.broadcast %cst_8 : f32 to vector<1x1xf32>
      %c0_9 = arith.constant 0 : index
      %c0_10 = arith.constant 0 : index
      %16 = vector.load %arg3[%c0_9, %c0_10] : memref<1x1xf32, #tpu.memory_space<vmem>>, vector<1x1xf32>
      tpu.vector_store %arg3[%c0_9, %c0_10], %15 {strides = array<i32>} : memref<1x1xf32, #tpu.memory_space<vmem>>, vector<1x1xf32>,
    } else {
    }
    %c0 = arith.constant 0 : index
    %c0_1 = arith.constant 0 : index
    %3 = vector.load %arg3[%c0, %c0_1] : memref<1x1xf32, #tpu.memory_space<vmem>>, vector<1x1xf32>
    %c0_2 = arith.constant 0 : index
    %c0_3 = arith.constant 0 : index
    %4 = vector.load %arg1[%c0_2, %c0_3] : memref<8x1024xf32, #tpu.memory_space<vmem>>, vector<8x1024xf32>
    %5 = vector.shape_cast %4 : vector<8x1024xf32> to vector<1x8x1024xf32>
    %cst = arith.constant dense<0.000000e+00> : vector<1xf32>
    %6 = vector.multi_reduction <add>, %5, %cst [1, 2] : vector<1x8x1024xf32> to vector<1xf32>
    %7 = vector.shape_cast %6 : vector<1xf32> to vector<1x1x1xf32>
    %8 = vector.extract %7[0, 0, 0] : f32 from vector<1x1x1xf32>
    %9 = vector.broadcast %8 : f32 to vector<1x1xf32>
    %10 = arith.addf %3, %9 : vector<1x1xf32>
    %c0_4 = arith.constant 0 : index
    %c0_5 = arith.constant 0 : index
    %11 = vector.load %arg3[%c0_4, %c0_5] : memref<1x1xf32, #tpu.memory_space<vmem>>, vector<1x1xf32>
    tpu.vector_store %arg3[%c0_4, %c0_5], %10 {strides = array<i32>} : memref<1x1xf32, #tpu.memory_space<vmem>>, vector<1x1xf32>,
    %c0_i32_6 = arith.constant 0 : i32
    %12 = arith.cmpi eq, %arg0, %c0_i32_6 : i32
    %13 = arith.extui %12 : i1 to i32
    %c0_i32_7 = arith.constant 0 : i32
    %14 = arith.cmpi ne, %13, %c0_i32_7 : i32
    scf.if %14 {
      %c0_8 = arith.constant 0 : index
      %c0_9 = arith.constant 0 : index
      %15 = vector.load %arg3[%c0_8, %c0_9] : memref<1x1xf32, #tpu.memory_space<vmem>>, vector<1x1xf32>
      %cst_10 = arith.constant 4.8828125E-4 : f32
      %16 = vector.broadcast %cst_10 : f32 to vector<1x1xf32>
      %17 = arith.mulf %15, %16 : vector<1x1xf32>
      %c0_11 = arith.constant 0 : index
      %c0_12 = arith.constant 0 : index
      %18 = vector.load %arg2[%c0_11, %c0_12] : memref<1x1xf32, #tpu.memory_space<vmem>>, vector<1x1xf32>
      tpu.vector_store %arg2[%c0_11, %c0_12], %17 {strides = array<i32>} : memref<1x1xf32, #tpu.memory_space<vmem>>, vector<1x1xf32>,
    } else {
    }
    return
  }
  func.func @transform_0(%arg0: i32) -> (i32, i32) {
    %c0_i32 = arith.constant 0 : i32
    %c0_i32_0 = arith.constant 0 : i32
    return %arg0, %c0_i32 : i32, i32
  }
  func.func @transform_1(%arg0: i32) -> (i32, i32) {
    %c0_i32 = arith.constant 0 : i32
    %c0_i32_0 = arith.constant 0 : i32
    %c0_i32_1 = arith.constant 0 : i32
    return %c0_i32, %c0_i32_0 : i32, i32
  }
}

</mosaic_0001>

<bundles_post_ra>
// kernel: tpu_custom_call.1
= control target key start
LH: loop header
LB: loop body
LE: loop exit
PB: predicated region body
PF: predicated region fallthrough
CT: control target
= control target key end

     0   :  { %6 = vsyncpa [#allocation4], 0  ;;  %s170_s0 = inlined_call_operand.hbm [shape: f32[8,1024], index: 0, kind: input, shape index: {}]   ;;  %s171_s1 = inlined_call_operand.hbm [shape: f32[1,1], index: 1, kind: output, shape index: {}]  }
   0x1   :  { %7 = vsyncpa [#allocation5], 0  ;;  %s130_s6 = smov [#allocation3]   ;;  %s82_s10 = scalar_lea.hbm %s170_s0, 1024 }
   0x2   :  { %s14_s7 = sshll.u32 %s130_s6, 4  ;;  %p83_p0 = scmp.ne.s32.totalorder %s170_s0, %s82_s10  ;;  %s15_s7 = int_to_ptr.vmem [resolvable:$true] %s14_s7 }
   0x3   :  { %p86_p1 = scmp.lt.u32.totalorder %s82_s10, %s170_s0 }
   0x5   :  { %p88_p2 = pnand %p86_p1, %p83_p0 }
   0x7   :  { %91 = shalt.err (!%p88_p2)
}
   0x8   :  { %s92_s15 = scalar_lea.vmem %s15_s7, 1024  ;;  %p97_p4 = scmp.lt.s32.totalorder %s15_s7, %s15_s7 }
   0x9   :  { %p93_p3 = scmp.ne.s32.totalorder %s15_s7, %s92_s15  ;;  %p98_p5 = scmp.lt.s32.totalorder %s92_s15, %s92_s15 }
   0xb   :  { %p99_p6 = por %p98_p5, %p97_p4 }
   0xd   :  { %p100_p7 = pnand %p99_p6, %p93_p3 }
   0xf   :  { %103 = shalt.err (!%p100_p7)
}
  0x10   :  { %17 = dma.hbm_to_vmem [thread:$0]  %s170_s0, 1024, %s15_s7, [#allocation4]  }
  0x11   :  { %126 = dma.done.wait [#allocation4], 1024  }
  0x12   :  { %127 = vsyncadd [#allocation4], 4294966272  ;;  %v28_v0 = vld [vmem:[#allocation3] sm:$0xff]  ;;  %v29_v1 = vld [vmem:[#allocation3 + $0x8] sm:$0xff]  ;;  %vm25_vm0 = vcmask 0   ;;  %v131_v15 = vmov 0.0  }
  0x13   :  { %v30_v2 = vld [vmem:[#allocation3 + $0x10] sm:$0xff]  ;;  %v36_v3 = vadd.f32 %v29_v1, %v28_v0  ;;  %v31_v4 = vld [vmem:[#allocation3 + $0x18] sm:$0xff]  ;;  %v32_v6 = vld [vmem:[#allocation3 + $0x20] sm:$0xff]  ;;  %26 = vst.msk [vmem:[#allocation2] sm:$0x1] %vm25_vm0, %v131_v15  ;;  %s132_s18 = smov [#allocation6]  }
  0x14   :  { %v33_v8 = vld [vmem:[#allocation3 + $0x28] sm:$0xff]  ;;  %v34_v10 = vld [vmem:[#allocation3 + $0x30] sm:$0xff]  ;;  %v35_v12 = vld [vmem:[#allocation3 + $0x38] sm:$0xff]  ;;  %s68_s19 = sshll.u32 %s132_s18, 4  ;;  %s69_s19 = int_to_ptr.vmem [resolvable:$true] %s68_s19 }
  0x15   :  { %v37_v5 = vadd.f32 %v36_v3, %v30_v2  ;;  %s104_s20 = scalar_lea.vmem %s69_s19, 16  ;;  %s108_s21 = scalar_lea.vmem %s69_s19, 32 }
  0x16   :  { %p105_p8 = scmp.ne.s32.totalorder %s69_s19, %s104_s20  ;;  %p109_p9 = scmp.lt.s32.totalorder %s69_s19, %s69_s19 }
  0x17   :  { %v38_v7 = vadd.f32 %v37_v5, %v31_v4  ;;  %p110_p10 = scmp.lt.s32.totalorder %s108_s21, %s104_s20 }
  0x19   :  { %v39_v9 = vadd.f32 %v38_v7, %v32_v6  ;;  %p111_p11 = por %p110_p10, %p109_p9 }
  0x1a   :  { %v27_v23 = vld [vmem:[#allocation2] sm:$0x1] }
  0x1b   :  { %v40_v11 = vadd.f32 %v39_v9, %v33_v8  ;;  %p112_p12 = pnand %p111_p11, %p105_p8 }
  0x1d   :  { %v41_v13 = vadd.f32 %v40_v11, %v34_v10 }
  0x1f   :  { %v42_v14 = vadd.f32 %v41_v13, %v35_v12 }
  0x21   :  { %43 = vadd.xlane.f32.xlu0 %v42_v14 }
  0xae   :  { %v44_v16 = vpop.xlane.xlu0 %43 }
  0xaf   :  { %v45_v17 = vrot.slane %v44_v16, 4 }
  0xb1   :  { %v46_v18 = vadd.f32 %v45_v17, %v44_v16 }
  0xb3   :  { %v47_v19 = vrot.slane %v46_v18, 2 }
  0xb5   :  { %v48_v20 = vadd.f32 %v47_v19, %v46_v18 }
  0xb7   :  { %v49_v21 = vrot.slane %v48_v20, 1 }
  0xb9   :  { %v50_v22 = vadd.f32 %v49_v21, %v48_v20 }
  0xbb   :  { %77 = vpush %v50_v22 }
  0xec   :  { %s78_s0 = spop %77 }
  0xed   :  { %v52_v24 = vstv %s78_s0 }
  0xee   :  { %v53_v25 = vadd.f32 %v52_v24, %v27_v23 }
  0xf0   :  { %55 = vst.msk [vmem:[#allocation2] sm:$0x1] %vm25_vm0, %v53_v25 }
  0xf7   :  { %v59_v26 = vld [vmem:[#allocation2] sm:$0x1] }
  0xf8   :  { %v60_v27 = vmul.f32 0.00048828125, %v59_v26 }
  0xfa   :  { %61 = vst.msk [vmem:[#allocation6] sm:$0x1] %vm25_vm0, %v60_v27 }
  0xfb   :  { %115 = shalt.err (!%p112_p12)
}
  0xfc   :  { %s116_s24 = scalar_lea.hbm %s171_s1, 16 }
  0xfd   :  { %p117_p13 = scmp.ne.s32.totalorder %s171_s1, %s116_s24  ;;  %p120_p0 = scmp.lt.u32.totalorder %s116_s24, %s171_s1 }
  0xff   :  { %p122_p1 = pnand %p120_p0, %p117_p13 }
 0x101   :  { %125 = shalt.err (!%p122_p1)
}
 0x102   :  { %71 = dma.vmem_to_hbm [thread:$0]  %s69_s19, 16, %s171_s1, [#allocation5]  }
 0x103   :  { %128 = dma.done.wait [#allocation5], 16  }
 0x104   :  { %129 = vsyncadd [#allocation5], 4294967280 }
 0x105   :  { %75 = vsyncpa [#allocation4], 1 }
 0x106   :  { %76 = vsyncpa [#allocation5], 1 }

</bundles_post_ra>
